<compile_context>
chip_gen: v7x
topology: tpu7x:2x2x1
jax: 0.10.0
libtpu: 0.0.40
codegen_flags: <defaults>
</compile_context>

<pallas_src>
import functools

import jax
import jax.numpy as jnp
from jax.experimental import pallas as pl
from jax.experimental.pallas import tpu as pltpu

LANE = 128


def _round_up(x, m):
    return (x + m - 1) // m * m


def mlp_kernel(x_ref, w1_ref, b1_ref, w2_ref, b2_ref, w3_ref, b3_ref, y_ref):
    # x_ref: (tile_m, n_in) bf16 batch tile; weights bf16 / biases f32, all
    # VMEM-resident across the whole grid loop.  Full forward pass
    # (3 matmuls + bias adds + 2 ReLUs) fused into this body.
    x = x_ref[...]                                                     # bf16

    h = jnp.dot(x, w1_ref[...], preferred_element_type=jnp.float32)   # MXU, f32 acc
    h = jnp.maximum(h + b1_ref[...], 0.0)                             # f32 VPU

    h = jnp.dot(h.astype(jnp.bfloat16), w2_ref[...],
                preferred_element_type=jnp.float32)
    h = jnp.maximum(h + b2_ref[...], 0.0)

    y = jnp.dot(h.astype(jnp.bfloat16), w3_ref[...],
                preferred_element_type=jnp.float32)
    # Lane-dense (tile_m, n_out_padded) store -> unmasked vst.
    y_ref[...] = (y + b3_ref[...]).astype(y_ref.dtype)


@functools.partial(jax.jit, static_argnames=("tile_m",))
def mlp_forward(x, w1, b1, w2, b2, w3, b3, *, tile_m=512):
    batch, n_in = x.shape
    n_units = w1.shape[1]
    n_out = w3.shape[1]

    # Lane-dense output slab: pad output features up to a multiple of 128 so the
    # y tile avoids masked partial stores; padded columns are zero weight / zero
    # bias and are sliced off below.
    n_out_p = _round_up(n_out, LANE)

    # bf16 MXU operands; biases stay f32 (added on the f32 accumulator).
    x_bf = x.astype(jnp.bfloat16)
    w1_bf = w1.astype(jnp.bfloat16)
    w2_bf = w2.astype(jnp.bfloat16)
    w3_bf = jnp.pad(w3, ((0, 0), (0, n_out_p - n_out))).astype(jnp.bfloat16)
    b1_f = b1.reshape(1, n_units).astype(jnp.float32)
    b2_f = b2.reshape(1, n_units).astype(jnp.float32)
    b3_f = jnp.pad(b3.reshape(1, n_out).astype(jnp.float32),
                   ((0, 0), (0, n_out_p - n_out)))

    # Batch tile: multiple of 128, as large as VMEM comfortably allows.  On v7x,
    # prefer a tile that yields >= 2 grid steps so both TensorCores get work.
    tile_m = min(tile_m, _round_up(batch, LANE))
    grid = (pl.cdiv(batch, tile_m),)

    # Weights/biases: full array, block index pinned to 0 -> VMEM-resident for
    # every grid step; single-buffered since the block never changes.
    def resident(a):
        return pl.BlockSpec(a.shape, lambda i: (0,) * a.ndim,
                            pipeline_mode=pl.Buffered(1))

    # Explicit VMEM budget: resident weights/biases (single buffer) +
    # double-buffered x / y tiles + headroom for the f32 h intermediates.
    weight_bytes = ((w1_bf.size + w2_bf.size + w3_bf.size) * 2
                    + (b1_f.size + b2_f.size + b3_f.size) * 4)
    io_bytes = 2 * (tile_m * n_in * 2 + tile_m * n_out_p * 4)
    h_bytes = 4 * tile_m * max(n_units, n_out_p) * 4
    vmem_limit = int(1.5 * (weight_bytes + io_bytes + h_bytes)) + (4 << 20)
    vmem_limit = max(min(vmem_limit, 100 << 20), 16 << 20)

    flops = 2 * batch * (n_in * n_units + n_units * n_units + n_units * n_out_p)
    bytes_accessed = batch * n_in * 2 + batch * n_out_p * 4 + weight_bytes

    y_pad = pl.pallas_call(
        mlp_kernel,
        out_shape=jax.ShapeDtypeStruct((batch, n_out_p), jnp.float32),
        grid=grid,
        in_specs=[
            pl.BlockSpec((tile_m, n_in), lambda i: (i, 0)),  # x: tiled over batch
            resident(w1_bf), resident(b1_f),
            resident(w2_bf), resident(b2_f),
            resident(w3_bf), resident(b3_f),
        ],
        out_specs=pl.BlockSpec((tile_m, n_out_p), lambda i: (i, 0)),
        compiler_params=pltpu.CompilerParams(
            dimension_semantics=("parallel",),   # batch tiles independent -> v7x megacore
            vmem_limit_bytes=vmem_limit,
        ),
        cost_estimate=pl.CostEstimate(
            flops=flops, bytes_accessed=bytes_accessed, transcendentals=0),
    )(x_bf, w1_bf, b1_f, w2_bf, b2_f, w3_bf, b3_f)

    # TODO(synk): when n_units grows so the three weight matrices no longer fit
    # VMEM-resident (v7x's 64 MiB hits first), stream weight tiles from HBM
    # (memory_space=pl.ANY + pltpu.emit_pipeline) instead of pinning them.
    return y_pad[:, :n_out]


def init_linear(key, n_in, n_out):
    # Mimic PyTorch nn.Linear init: U(-1/sqrt(n_in), 1/sqrt(n_in)), deterministic.
    kw, kb = jax.random.split(key)
    bound = 1.0 / jnp.sqrt(jnp.float32(n_in))
    w = jax.random.uniform(kw, (n_in, n_out), jnp.float32, -bound, bound)
    b = jax.random.uniform(kb, (1, n_out), jnp.float32, -bound, bound)
    return w, b


def mlp_reference_bf16(x, w1, b1, w2, b2, w3, b3):
    # Pure-JAX reference matching the kernel's numerics (bf16 operands, f32 acc).
    h = jnp.dot(x.astype(jnp.bfloat16), w1.astype(jnp.bfloat16),
                preferred_element_type=jnp.float32)
    h = jnp.maximum(h + b1, 0.0)
    h = jnp.dot(h.astype(jnp.bfloat16), w2.astype(jnp.bfloat16),
                preferred_element_type=jnp.float32)
    h = jnp.maximum(h + b2, 0.0)
    return jnp.dot(h.astype(jnp.bfloat16), w3.astype(jnp.bfloat16),
                   preferred_element_type=jnp.float32) + b3


def mlp_reference_f32(x, w1, b1, w2, b2, w3, b3):
    h = jnp.maximum(x @ w1 + b1, 0.0)
    h = jnp.maximum(h @ w2 + b2, 0.0)
    return h @ w3 + b3


if __name__ == "__main__":
    # Shapes consistent with the module: 2-D (batch, n_in) input, toy hidden dims.
    batch, n_in, n_units, n_out = 512, 16, 32, 8
    tile_m = 256  # grid=(2,): both v7x TensorCores get a tile; no-op on v5e/v6e

    key = jax.random.PRNGKey(0)
    kx, k1, k2, k3 = jax.random.split(key, 4)

    x = jax.random.normal(kx, (batch, n_in), jnp.float32)
    w1, b1 = init_linear(k1, n_in, n_units)
    w2, b2 = init_linear(k2, n_units, n_units)
    w3, b3 = init_linear(k3, n_units, n_out)

    y = mlp_forward(x, w1, b1, w2, b2, w3, b3, tile_m=tile_m)
    jax.block_until_ready(y)
    assert y.shape == (batch, n_out)

    y_bf = mlp_reference_bf16(x, w1, b1, w2, b2, w3, b3)
    y_f32 = mlp_reference_f32(x, w1, b1, w2, b2, w3, b3)
    assert jnp.allclose(y, y_bf, atol=2e-3, rtol=2e-3), "mismatch vs bf16-path reference"
    assert jnp.allclose(y, y_f32, atol=5e-2, rtol=5e-2), "mismatch vs f32 reference"

    # Partial final batch tile (batch % tile_m != 0): padded rows must be discarded.
    xp = x[:500]
    yp = mlp_forward(xp, w1, b1, w2, b2, w3, b3, tile_m=tile_m)
    jax.block_until_ready(yp)
    assert yp.shape == (500, n_out)
    assert jnp.allclose(yp, y_bf[:500], atol=2e-3, rtol=2e-3), "partial-tile mismatch"

    print("KERNEL_OK")
</pallas_src>

<mosaic_0001>
module attributes {stable_mosaic.version = 11 : i64} {
  func.func @mlp_kernel(%arg0: i32, %arg1: memref<256x16xbf16, #tpu.memory_space<vmem>>, %arg2: memref<16x32xbf16, #tpu.memory_space<vmem>>, %arg3: memref<1x32xf32, #tpu.memory_space<vmem>>, %arg4: memref<32x32xbf16, #tpu.memory_space<vmem>>, %arg5: memref<1x32xf32, #tpu.memory_space<vmem>>, %arg6: memref<32x128xbf16, #tpu.memory_space<vmem>>, %arg7: memref<1x128xf32, #tpu.memory_space<vmem>>, %arg8: memref<256x128xf32, #tpu.memory_space<vmem>>) attributes {dimension_semantics = [#tpu.dimension_semantics<parallel>], iteration_bounds = array<i64: 2>, scalar_prefetch = 0 : i64, scratch_operands = 0 : i64, tpu.core_type = #tpu.core_type<tc>, window_params = [{transform_indices = @transform_0, window_bounds = array<i64: 256, 16>}, {pipeline_mode = #tpu.pipeline_mode<synchronous>, transform_indices = @transform_1, window_bounds = array<i64: 16, 32>}, {pipeline_mode = #tpu.pipeline_mode<synchronous>, transform_indices = @transform_2, window_bounds = array<i64: 1, 32>}, {pipeline_mode = #tpu.pipeline_mode<synchronous>, transform_indices = @transform_3, window_bounds = array<i64: 32, 32>}, {pipeline_mode = #tpu.pipeline_mode<synchronous>, transform_indices = @transform_4, window_bounds = array<i64: 1, 32>}, {pipeline_mode = #tpu.pipeline_mode<synchronous>, transform_indices = @transform_5, window_bounds = array<i64: 32, 128>}, {pipeline_mode = #tpu.pipeline_mode<synchronous>, transform_indices = @transform_6, window_bounds = array<i64: 1, 128>}, {transform_indices = @transform_7, window_bounds = array<i64: 256, 128>}]} {
    %c0 = arith.constant 0 : index
    %c0_0 = arith.constant 0 : index
    %0 = vector.load %arg1[%c0, %c0_0] : memref<256x16xbf16, #tpu.memory_space<vmem>>, vector<256x16xbf16>
    %c0_1 = arith.constant 0 : index
    %c0_2 = arith.constant 0 : index
    %1 = vector.load %arg2[%c0_1, %c0_2] : memref<16x32xbf16, #tpu.memory_space<vmem>>, vector<16x32xbf16>
    %cst = arith.constant dense<0.000000e+00> : vector<256x32xf32>
    %2 = tpu.matmul %0, %1, %cst {dimension_numbers = #tpu.dot_dimension_numbers<[1], [0], [0], [1], [0, 0, 1, 1], [], []>} : vector<256x16xbf16>, vector<16x32xbf16>, vector<256x32xf32> -> vector<256x32xf32>
    %c0_3 = arith.constant 0 : index
    %c0_4 = arith.constant 0 : index
    %3 = vector.load %arg3[%c0_3, %c0_4] : memref<1x32xf32, #tpu.memory_space<vmem>>, vector<1x32xf32>
    %4 = vector.broadcast %3 : vector<1x32xf32> to vector<256x32xf32>
    %5 = arith.addf %2, %4 : vector<256x32xf32>
    %cst_5 = arith.constant 0.000000e+00 : f32
    %6 = vector.broadcast %cst_5 : f32 to vector<256x32xf32>
    %7 = arith.maximumf %5, %6 : vector<256x32xf32>
    %8 = arith.truncf %7 : vector<256x32xf32> to vector<256x32xbf16>
    %c0_6 = arith.constant 0 : index
    %c0_7 = arith.constant 0 : index
    %9 = vector.load %arg4[%c0_6, %c0_7] : memref<32x32xbf16, #tpu.memory_space<vmem>>, vector<32x32xbf16>
    %cst_8 = arith.constant dense<0.000000e+00> : vector<256x32xf32>
    %10 = tpu.matmul %8, %9, %cst_8 {dimension_numbers = #tpu.dot_dimension_numbers<[1], [0], [0], [1], [0, 0, 1, 1], [], []>} : vector<256x32xbf16>, vector<32x32xbf16>, vector<256x32xf32> -> vector<256x32xf32>
    %c0_9 = arith.constant 0 : index
    %c0_10 = arith.constant 0 : index
    %11 = vector.load %arg5[%c0_9, %c0_10] : memref<1x32xf32, #tpu.memory_space<vmem>>, vector<1x32xf32>
    %12 = vector.broadcast %11 : vector<1x32xf32> to vector<256x32xf32>
    %13 = arith.addf %10, %12 : vector<256x32xf32>
    %cst_11 = arith.constant 0.000000e+00 : f32
    %14 = vector.broadcast %cst_11 : f32 to vector<256x32xf32>
    %15 = arith.maximumf %13, %14 : vector<256x32xf32>
    %16 = arith.truncf %15 : vector<256x32xf32> to vector<256x32xbf16>
    %c0_12 = arith.constant 0 : index
    %c0_13 = arith.constant 0 : index
    %17 = vector.load %arg6[%c0_12, %c0_13] : memref<32x128xbf16, #tpu.memory_space<vmem>>, vector<32x128xbf16>
    %cst_14 = arith.constant dense<0.000000e+00> : vector<256x128xf32>
    %18 = tpu.matmul %16, %17, %cst_14 {dimension_numbers = #tpu.dot_dimension_numbers<[1], [0], [0], [1], [0, 0, 1, 1], [], []>} : vector<256x32xbf16>, vector<32x128xbf16>, vector<256x128xf32> -> vector<256x128xf32>
    %c0_15 = arith.constant 0 : index
    %c0_16 = arith.constant 0 : index
    %19 = vector.load %arg7[%c0_15, %c0_16] : memref<1x128xf32, #tpu.memory_space<vmem>>, vector<1x128xf32>
    %20 = vector.broadcast %19 : vector<1x128xf32> to vector<256x128xf32>
    %21 = arith.addf %18, %20 : vector<256x128xf32>
    %c0_17 = arith.constant 0 : index
    %c0_18 = arith.constant 0 : index
    %22 = vector.load %arg8[%c0_17, %c0_18] : memref<256x128xf32, #tpu.memory_space<vmem>>, vector<256x128xf32>
    tpu.vector_store %arg8[%c0_17, %c0_18], %21 {strides = array<i32>} : memref<256x128xf32, #tpu.memory_space<vmem>>, vector<256x128xf32>,
    return
  }
  func.func @transform_0(%arg0: i32) -> (i32, i32) {
    %c0_i32 = arith.constant 0 : i32
    %c0_i32_0 = arith.constant 0 : i32
    return %arg0, %c0_i32 : i32, i32
  }
  func.func @transform_1(%arg0: i32) -> (i32, i32) {
    %c0_i32 = arith.constant 0 : i32
    %c0_i32_0 = arith.constant 0 : i32
    %c0_i32_1 = arith.constant 0 : i32
    return %c0_i32, %c0_i32_0 : i32, i32
  }
  func.func @transform_2(%arg0: i32) -> (i32, i32) {
    %c0_i32 = arith.constant 0 : i32
    %c0_i32_0 = arith.constant 0 : i32
    %c0_i32_1 = arith.constant 0 : i32
    return %c0_i32, %c0_i32_0 : i32, i32
  }
  func.func @transform_3(%arg0: i32) -> (i32, i32) {
    %c0_i32 = arith.constant 0 : i32
    %c0_i32_0 = arith.constant 0 : i32
    %c0_i32_1 = arith.constant 0 : i32
    return %c0_i32, %c0_i32_0 : i32, i32
  }
  func.func @transform_4(%arg0: i32) -> (i32, i32) {
    %c0_i32 = arith.constant 0 : i32
    %c0_i32_0 = arith.constant 0 : i32
    %c0_i32_1 = arith.constant 0 : i32
    return %c0_i32, %c0_i32_0 : i32, i32
  }
  func.func @transform_5(%arg0: i32) -> (i32, i32) {
    %c0_i32 = arith.constant 0 : i32
    %c0_i32_0 = arith.constant 0 : i32
    %c0_i32_1 = arith.constant 0 : i32
    return %c0_i32, %c0_i32_0 : i32, i32
  }
  func.func @transform_6(%arg0: i32) -> (i32, i32) {
    %c0_i32 = arith.constant 0 : i32
    %c0_i32_0 = arith.constant 0 : i32
    %c0_i32_1 = arith.constant 0 : i32
    return %c0_i32, %c0_i32_0 : i32, i32
  }
  func.func @transform_7(%arg0: i32) -> (i32, i32) {
    %c0_i32 = arith.constant 0 : i32
    %c0_i32_0 = arith.constant 0 : i32
    return %arg0, %c0_i32 : i32, i32
  }
}

</mosaic_0001>

<bundles_post_ra>
// kernel: mlp_forward.1
= control target key start
LH: loop header
LB: loop body
LE: loop exit
PB: predicated region body
PF: predicated region fallthrough
CT: control target
= control target key end

     0   :  { %s1590_s24 = smov 0   ;;  %s1843_s0 = inlined_call_operand.vmem [shape: bf16[512,16], index: 0, kind: input, shape index: {}]   ;;  %s1844_s1 = inlined_call_operand.vmem [shape: bf16[16,32], index: 1, kind: input, shape index: {}]   ;;  %s1845_s2 = inlined_call_operand.vmem [shape: f32[1,32], index: 2, kind: input, shape index: {}]   ;;  %s1846_s3 = inlined_call_operand.vmem [shape: bf16[32,32], index: 3, kind: input, shape index: {}]   ;;  %s1847_s4 = inlined_call_operand.vmem [shape: f32[1,32], index: 4, kind: input, shape index: {}]   ;;  %s1848_s5 = inlined_call_operand.vmem [shape: bf16[32,128], index: 5, kind: input, shape index: {}]   ;;  %s1849_s6 = inlined_call_operand.vmem [shape: f32[1,128], index: 6, kind: input, shape index: {}]   ;;  %s1850_s7 = inlined_call_operand.vmem [shape: f32[512,128], index: 7, kind: output, shape index: {}]  }
   0x1 LB: > { %s1269_s25 = sadd.s32 4294967295, %s1548_s24   ;;  %p1273_p0 = scmp.ge.s32.totalorder %s1548_s24, 1  ;;  %s1548_s24 = sphi %s1590_s24, %s17_s24  }
   0x2   : > { %p238_p1 = scmp.lt.s32.totalorder %s1548_s24, 3 }
   0x4   : > { %p239_p2 = pnand %p1273_p0, %p238_p1 }
   0x5   : > { %v1521_v0 = vld [vmem:[%s1844_s1] sm:$0xff] (!%p239_p2)   ;;  %s1274_s28 = sshll.u32 (!%p239_p2), %s1269_s25, 5  ;;  %vm410_vm0 = vcmask (!%p239_p2), 130048   ;;  %v1539_v8 = vld [vmem:[%s1846_s3 + $0x8] sm:$0xff] (!%p239_p2)   ;;  %vm691_vm1 = vcmask (!%p239_p2), 261120  }
   0x6   : > { %242 = sbr.rel (%p239_p2) target bundleno = 736 (0x2e0), region = 48  ;;  %p271_p3 = scmp.lt.s32.totalorder (!%p239_p2), %s1274_s28, 63  ;;  %1405 = vmatprep.subr.bf16.mxu0 (!%p239_p2), %v1521_v0  ;;  %1511 = vmatprep.subr.bf16.mxu1 (!%p239_p2), %v1521_v0  ;;  %v1538_v1 = vld [vmem:[%s1846_s3] sm:$0xff] (!%p239_p2)   ;;  %v1541_v20 = vld [vmem:[%s1848_s5 + $0x8] sm:$0xff] (!%p239_p2)  }
   0x7   : > { %1406 = vmatpush3.bf16.msra.mxu0 (!%p239_p2), %v1521_v0  ;;  %1512 = vmatpush3.bf16.msra.mxu1 (!%p239_p2), %v1521_v0  ;;  %v1540_v19 = vld [vmem:[%s1848_s5] sm:$0xff] (!%p239_p2)  }
   0x8   : > { %1439 = vmatprep.subr.bf16.mxu1 (!%p239_p2), %v1538_v1  ;;  %1475 = vmatprep.subr.bf16.mxu0 (!%p239_p2), %v1540_v19  ;;  %v1656_v21 = vld [vmem:[%s1845_s2] ss:$0 sm:$0xff] (!%p239_p2) }
   0xd   : > { %s1852_s28 = smov (!%p271_p3, %s1274_s28), 63 }
   0xe   : > { %s1275_s8 = sshll.u32 %s1852_s28, 2  ;;  %s1277_s22 = sshll.u32 %s1852_s28, 3 }
   0xf   : > { %s1610_s11 = scalar_lea.vmem %s1843_s0, %s1275_s8  ;;  %s1774_s29 = scalar_lea.vmem %s1850_s7, %s1277_s22 }
  0x10   : > { %v1522_v2 = vld [vmem:[%s1610_s11] sm:$0xff]   ;;  %v1523_v3 = vld [vmem:[%s1610_s11 + $0x8] sm:$0xff]   ;;  %v1524_v4 = vld [vmem:[%s1610_s11 + $0x10] sm:$0xff]  }
  0x11   : > { %1407 = vmatprep.mubr.msk.bf16.mxu0 %vm410_vm0, %v1522_v2  ;;  %v1525_v5 = vld [vmem:[%s1610_s11 + $0x18] sm:$0xff]   ;;  %v1526_v6 = vld [vmem:[%s1610_s11 + $0x20] sm:$0xff]   ;;  %v1531_v9 = vld [vmem:[%s1610_s11 + $0x48] sm:$0xff]  }
  0x12   : > { %1408 = vmatmul.mubr.msk.bf16.vlgmr.msra.gmra.mrb[0].mxu0 %vm410_vm0, %v1523_v3  ;;  %v1530_v7 = vld [vmem:[%s1610_s11 + $0x40] sm:$0xff]   ;;  %v1532_v10 = vld [vmem:[%s1610_s11 + $0x50] sm:$0xff]   ;;  %v1527_v11 = vld [vmem:[%s1610_s11 + $0x28] sm:$0xff]  }
  0x13   : > { %1411 = vmatprep.mubr.msk.bf16.mxu0 %vm410_vm0, %v1524_v4  ;;  %1423 = vmatprep.mubr.msk.bf16.mxu1 %vm410_vm0, %v1530_v7  ;;  %v1533_v12 = vld [vmem:[%s1610_s11 + $0x58] sm:$0xff]   ;;  %v1528_v13 = vld [vmem:[%s1610_s11 + $0x30] sm:$0xff]   ;;  %v1534_v14 = vld [vmem:[%s1610_s11 + $0x60] sm:$0xff]  }
  0x14   : > { %1424 = vmatmul.mubr.msk.bf16.vlgmr.msra.gmra.mrb[0].mxu1 %vm410_vm0, %v1531_v9  ;;  %v1529_v15 = vld [vmem:[%s1610_s11 + $0x38] sm:$0xff]   ;;  %v1535_v16 = vld [vmem:[%s1610_s11 + $0x68] sm:$0xff]   ;;  %v1536_v17 = vld [vmem:[%s1610_s11 + $0x70] sm:$0xff]   ;;  %1476 = vmatpush3.bf16.msra.mxu0 %v1540_v19 }
  0x15   : > { %1427 = vmatprep.mubr.msk.bf16.mxu1 %vm410_vm0, %v1532_v10  ;;  %1440 = vmatpush3.bf16.msra.mxu1 %v1538_v1  ;;  %v1537_v18 = vld [vmem:[%s1610_s11 + $0x78] sm:$0xff]  }
  0x16   : > { %1441 = vmatprep.subr.bf16.mxu1 %v1539_v8  ;;  %1477 = vmatprep.subr.bf16.mxu0 %v1541_v20 }
  0x18   : > { %1478 = vmatpush3.bf16.msra.mxu0 %v1541_v20 }
  0x19   : > { %1442 = vmatpush3.bf16.msra.mxu1 %v1539_v8 }
  0x1a   : > { %1412 = vmatmul.mubr.msk.bf16.gmra.mrb[4].mxu0 %vm410_vm0, %v1525_v5 }
  0x1b   : > { %1415 = vmatprep.mubr.msk.bf16.mxu0 %vm410_vm0, %v1526_v6 }
  0x1c   : > { %1428 = vmatmul.mubr.msk.bf16.gmra.mrb[4].mxu1 %vm410_vm0, %v1533_v12 }
  0x1d   : > { %1431 = vmatprep.mubr.msk.bf16.mxu1 %vm410_vm0, %v1534_v14 }
  0x22   : > { %1416 = vmatmul.mubr.msk.bf16.gmra.mrb[8].mxu0 %vm410_vm0, %v1527_v11 }
  0x23   : > { %1419 = vmatprep.mubr.msk.bf16.mxu0 %vm410_vm0, %v1528_v13 }
  0x24   : > { %1432 = vmatmul.mubr.msk.bf16.gmra.mrb[8].mxu1 %vm410_vm0, %v1535_v16 }
  0x25   : > { %1435 = vmatprep.mubr.msk.bf16.mxu1 %vm410_vm0, %v1536_v17 }
  0x2a   : > { %1420 = vmatmul.mubr.msk.bf16.gmra.mrb[12].mxu0 %vm410_vm0, %v1529_v15 }
  0x2c   : > { %1436 = vmatmul.mubr.msk.bf16.gmra.mrb[12].mxu1 %vm410_vm0, %v1537_v18 }
  0xe5   : > { %v1409_v22 = vpop.f32.mrb[0].mxu0 }
  0xe6   : > { %v502_v23 = vadd.f32 %v1409_v22, %v1656_v21  ;;  %v493_v24 = vpop.f32.mrb[1].mxu0 }
  0xe7   : > { %v494_v25 = vadd.f32 %v1656_v21, %v493_v24  ;;  %v1410_v26 = vpop.f32.mrb[2].mxu0  ;;  %v1425_v37 = vpop.f32.mrb[0].mxu1 }
  0xe8   : > { %v505_v27 = vadd.f32 %v1410_v26, %v1656_v21  ;;  %v496_v28 = vpop.f32.mrb[3].mxu0  ;;  %v622_v30 = vmax.f32 %v502_v23, 0.0  ;;  %v566_v40 = vadd.f32 %v1425_v37, %v1656_v21  ;;  %v557_v41 = vpop.f32.mrb[1].mxu1 }
  0xe9   : > { %v497_v29 = vadd.f32 %v1656_v21, %v496_v28  ;;  %v620_v32 = vmax.f32 %v494_v25, 0.0  ;;  %v558_v44 = vadd.f32 %v1656_v21, %v557_v41  ;;  %v1426_v45 = vpop.f32.mrb[2].mxu1 }
  0xea   : > { %v623_v31 = vmax.f32 %v505_v27, 0.0  ;;  %v638_v48 = vmax.f32 %v566_v40, 0.0  ;;  %v569_v49 = vadd.f32 %v1426_v45, %v1656_v21  ;;  %v560_v50 = vpop.f32.mrb[3].mxu1 }
  0xeb   : > { %v621_v33 = vmax.f32 %v497_v29, 0.0  ;;  %v636_v52 = vmax.f32 %v558_v44, 0.0  ;;  %v561_v53 = vadd.f32 %v1656_v21, %v560_v50 }
  0xec   : > { %v653_v34 = vpack.c.bf16 %v623_v31, %v622_v30  ;;  %v639_v56 = vmax.f32 %v569_v49, 0.0 }
  0xed   : > { %v652_v35 = vpack.c.bf16 %v621_v33, %v620_v32  ;;  %v1413_v36 = vpop.f32.mrb[4].mxu0  ;;  %v637_v59 = vmax.f32 %v561_v53, 0.0 }
  0xee   : > { %v518_v38 = vadd.f32 %v1413_v36, %v1656_v21  ;;  %v509_v39 = vpop.f32.mrb[5].mxu0  ;;  %v1672_v61 = vpack.c.bf16 %v639_v56, %v638_v48 }
  0xef   : > { %v510_v42 = vadd.f32 %v1656_v21, %v509_v39  ;;  %v1414_v43 = vpop.f32.mrb[6].mxu0  ;;  %1443 = vmatprep.mubr.msk.bf16.mxu1 %vm691_vm1, %v652_v35  ;;  %v1674_v0 = vpack.c.bf16 %v637_v59, %v636_v52  ;;  %v1429_v1 = vpop.f32.mrb[4].mxu1 }
  0xf0   : > { %v521_v46 = vadd.f32 %v1414_v43, %v1656_v21  ;;  %v512_v47 = vpop.f32.mrb[7].mxu0  ;;  %1444 = vmatmul.mubr.msk.bf16.vlgmr.msra.gmra.mrb[16].mxu1 %vm691_vm1, %v653_v34  ;;  %v626_v54 = vmax.f32 %v518_v38, 0.0  ;;  %v582_v4 = vadd.f32 %v1429_v1, %v1656_v21  ;;  %v573_v5 = vpop.f32.mrb[5].mxu1 }
  0xf1   : > { %v513_v51 = vadd.f32 %v1656_v21, %v512_v47  ;;  %v624_v57 = vmax.f32 %v510_v42, 0.0  ;;  %v574_v8 = vadd.f32 %v1656_v21, %v573_v5  ;;  %v1430_v9 = vpop.f32.mrb[6].mxu1 }
  0xf2   : > { %v627_v55 = vmax.f32 %v521_v46, 0.0  ;;  %v642_v12 = vmax.f32 %v582_v4, 0.0  ;;  %v585_v13 = vadd.f32 %v1430_v9, %v1656_v21  ;;  %v576_v14 = vpop.f32.mrb[7].mxu1 }
  0xf3   : > { %v625_v58 = vmax.f32 %v513_v51, 0.0  ;;  %v640_v16 = vmax.f32 %v574_v8, 0.0  ;;  %v577_v17 = vadd.f32 %v1656_v21, %v576_v14 }
  0xf4   : > { %v655_v60 = vpack.c.bf16 %v627_v55, %v626_v54  ;;  %v643_v20 = vmax.f32 %v585_v13, 0.0 }
  0xf5   : > { %v654_v62 = vpack.c.bf16 %v625_v58, %v624_v57  ;;  %v1417_v63 = vpop.f32.mrb[8].mxu0  ;;  %v641_v24 = vmax.f32 %v577_v17, 0.0 }
  0xf6   : > { %v534_v2 = vadd.f32 %v1417_v63, %v1656_v21  ;;  %v525_v3 = vpop.f32.mrb[9].mxu0  ;;  %v663_v26 = vpack.c.bf16 %v643_v20, %v642_v12 }
  0xf7   : > { %v526_v6 = vadd.f32 %v1656_v21, %v525_v3  ;;  %v1418_v7 = vpop.f32.mrb[10].mxu0  ;;  %1447 = vmatprep.mubr.msk.bf16.mxu1 %vm691_vm1, %v654_v62  ;;  %v662_v29 = vpack.c.bf16 %v641_v24, %v640_v16  ;;  %v1433_v30 = vpop.f32.mrb[8].mxu1 }
  0xf8   : > { %v537_v10 = vadd.f32 %v1418_v7, %v1656_v21  ;;  %v528_v11 = vpop.f32.mrb[11].mxu0  ;;  %1448 = vmatmul.mubr.msk.bf16.gmra.mrb[20].mxu1 %vm691_vm1, %v655_v60  ;;  %v630_v18 = vmax.f32 %v534_v2, 0.0  ;;  %v598_v33 = vadd.f32 %v1433_v30, %v1656_v21  ;;  %v589_v34 = vpop.f32.mrb[9].mxu1 }
  0xf9   : > { %v529_v15 = vadd.f32 %v1656_v21, %v528_v11  ;;  %v628_v22 = vmax.f32 %v526_v6, 0.0  ;;  %v590_v37 = vadd.f32 %v1656_v21, %v589_v34  ;;  %v1434_v38 = vpop.f32.mrb[10].mxu1 }
  0xfa   : > { %v631_v19 = vmax.f32 %v537_v10, 0.0  ;;  %v646_v41 = vmax.f32 %v598_v33, 0.0  ;;  %v601_v42 = vadd.f32 %v1434_v38, %v1656_v21  ;;  %v592_v43 = vpop.f32.mrb[11].mxu1 }
  0xfb   : > { %v629_v23 = vmax.f32 %v529_v15, 0.0  ;;  %v644_v45 = vmax.f32 %v590_v37, 0.0  ;;  %v593_v46 = vadd.f32 %v1656_v21, %v592_v43 }
  0xfc   : > { %v657_v25 = vpack.c.bf16 %v631_v19, %v630_v18  ;;  %v647_v49 = vmax.f32 %v601_v42, 0.0 }
  0xfd   : > { %v656_v27 = vpack.c.bf16 %v629_v23, %v628_v22  ;;  %v1421_v28 = vpop.f32.mrb[12].mxu0  ;;  %v645_v52 = vmax.f32 %v593_v46, 0.0 }
  0xfe   : > { %v550_v31 = vadd.f32 %v1421_v28, %v1656_v21  ;;  %v541_v32 = vpop.f32.mrb[13].mxu0  ;;  %v665_v54 = vpack.c.bf16 %v647_v49, %v646_v41 }
  0xff   : > { %v542_v35 = vadd.f32 %v1656_v21, %v541_v32  ;;  %v1422_v36 = vpop.f32.mrb[14].mxu0  ;;  %1451 = vmatprep.mubr.msk.bf16.mxu1 %vm691_vm1, %v656_v27  ;;  %v664_v56 = vpack.c.bf16 %v645_v52, %v644_v45  ;;  %v1437_v57 = vpop.f32.mrb[12].mxu1 }
 0x100   : > { %v553_v39 = vadd.f32 %v1422_v36, %v1656_v21  ;;  %v544_v40 = vpop.f32.mrb[15].mxu0  ;;  %1452 = vmatmul.mubr.msk.bf16.gmra.mrb[24].mxu1 %vm691_vm1, %v657_v25  ;;  %v634_v47 = vmax.f32 %v550_v31, 0.0  ;;  %v614_v58 = vadd.f32 %v1437_v57, %v1656_v21  ;;  %v605_v59 = vpop.f32.mrb[13].mxu1 }
 0x101   : > { %v545_v44 = vadd.f32 %v1656_v21, %v544_v40  ;;  %v632_v50 = vmax.f32 %v542_v35, 0.0  ;;  %v606_v60 = vadd.f32 %v1656_v21, %v605_v59  ;;  %v1438_v62 = vpop.f32.mrb[14].mxu1 }
 0x102   : > { %v635_v48 = vmax.f32 %v553_v39, 0.0  ;;  %v650_v63 = vmax.f32 %v614_v58, 0.0  ;;  %v617_v1 = vadd.f32 %v1438_v62, %v1656_v21  ;;  %v608_v2 = vpop.f32.mrb[15].mxu1 }
 0x103   : > { %v633_v51 = vmax.f32 %v545_v44, 0.0  ;;  %v648_v3 = vmax.f32 %v606_v60, 0.0  ;;  %v609_v4 = vadd.f32 %v1656_v21, %v608_v2  ;;  %v1715_v21 = vld [vmem:[%s1847_s4] ss:$0 sm:$0xff] }
 0x104   : > { %v659_v53 = vpack.c.bf16 %v635_v48, %v634_v47  ;;  %v651_v5 = vmax.f32 %v617_v1, 0.0 }
 0x105   : > { %v658_v55 = vpack.c.bf16 %v633_v51, %v632_v50  ;;  %v649_v6 = vmax.f32 %v609_v4, 0.0 }
 0x106   : > { %v667_v7 = vpack.c.bf16 %v651_v5, %v650_v63 }
 0x107   : > { %1455 = vmatprep.mubr.msk.bf16.mxu1 %vm691_vm1, %v658_v55  ;;  %v666_v8 = vpack.c.bf16 %v649_v6, %v648_v3 }
 0x108   : > { %1456 = vmatmul.mubr.msk.bf16.gmra.mrb[28].mxu1 %vm691_vm1, %v659_v53 }
 0x109   : > { %1459 = vmatprep.mubr.msk.bf16.mxu1 %vm691_vm1, %v1674_v0 }
 0x110   : > { %1460 = vmatmul.mubr.msk.bf16.gmra.mrb[32].mxu1 %vm691_vm1, %v1672_v61 }
 0x111   : > { %1463 = vmatprep.mubr.msk.bf16.mxu1 %vm691_vm1, %v662_v29 }
 0x118   : > { %1464 = vmatmul.mubr.msk.bf16.gmra.mrb[36].mxu1 %vm691_vm1, %v663_v26 }
 0x119   : > { %1467 = vmatprep.mubr.msk.bf16.mxu1 %vm691_vm1, %v664_v56 }
 0x120   : > { %1468 = vmatmul.mubr.msk.bf16.gmra.mrb[40].mxu1 %vm691_vm1, %v665_v54 }
 0x121   : > { %1471 = vmatprep.mubr.msk.bf16.mxu1 %vm691_vm1, %v666_v8 }
 0x128   : > { %1472 = vmatmul.mubr.msk.bf16.gmra.mrb[44].mxu1 %vm691_vm1, %v667_v7 }
 0x1c3   : > { %v1445_v0 = vpop.f32.mrb[16].mxu1 }
 0x1c4   : > { %v783_v61 = vadd.f32 %v1445_v0, %v1715_v21  ;;  %v774_v9 = vpop.f32.mrb[17].mxu1 }
 0x1c5   : > { %v775_v10 = vadd.f32 %v1715_v21, %v774_v9  ;;  %v1446_v11 = vpop.f32.mrb[18].mxu1 }
 0x1c6   : > { %v786_v12 = vadd.f32 %v1446_v11, %v1715_v21  ;;  %v777_v13 = vpop.f32.mrb[19].mxu1  ;;  %v903_v15 = vmax.f32 %v783_v61, 0.0 }
 0x1c7   : > { %v778_v14 = vadd.f32 %v1715_v21, %v777_v13  ;;  %v901_v17 = vmax.f32 %v775_v10, 0.0 }
 0x1c8   : > { %v904_v16 = vmax.f32 %v786_v12, 0.0 }
 0x1c9   : > { %v902_v18 = vmax.f32 %v778_v14, 0.0 }
 0x1ca   : > { %v934_v19 = vpack.c.bf16 %v904_v16, %v903_v15 }
 0x1cb   : > { %v933_v20 = vpack.c.bf16 %v902_v18, %v901_v17  ;;  %v1449_v22 = vpop.f32.mrb[20].mxu1 }
 0x1cc   : > { %v799_v23 = vadd.f32 %v1449_v22, %v1715_v21  ;;  %v790_v24 = vpop.f32.mrb[21].mxu1 }
 0x1cd   : > { %v791_v25 = vadd.f32 %v1715_v21, %v790_v24  ;;  %v1450_v26 = vpop.f32.mrb[22].mxu1  ;;  %1479 = vmatprep.mubr.msk.bf16.mxu0 %vm691_vm1, %v933_v20 }
 0x1ce   : > { %v802_v27 = vadd.f32 %v1450_v26, %v1715_v21  ;;  %v793_v28 = vpop.f32.mrb[23].mxu1  ;;  %1480 = vmatmul.mubr.msk.bf16.vlgmr.msra.gmra.mrb[16].mxu0 %vm691_vm1, %v934_v19  ;;  %v907_v30 = vmax.f32 %v799_v23, 0.0 }
 0x1cf   : > { %v794_v29 = vadd.f32 %v1715_v21, %v793_v28  ;;  %v905_v32 = vmax.f32 %v791_v25, 0.0 }
 0x1d0   : > { %v908_v31 = vmax.f32 %v802_v27, 0.0 }
 0x1d1   : > { %v906_v33 = vmax.f32 %v794_v29, 0.0 }
 0x1d2   : > { %v936_v34 = vpack.c.bf16 %v908_v31, %v907_v30 }
 0x1d3   : > { %v935_v35 = vpack.c.bf16 %v906_v33, %v905_v32  ;;  %v1453_v36 = vpop.f32.mrb[24].mxu1 }
 0x1d4   : > { %v815_v37 = vadd.f32 %v1453_v36, %v1715_v21  ;;  %v806_v38 = vpop.f32.mrb[25].mxu1 }
 0x1d5   : > { %v807_v39 = vadd.f32 %v1715_v21, %v806_v38  ;;  %v1454_v40 = vpop.f32.mrb[26].mxu1  ;;  %1483 = vmatprep.mubr.msk.bf16.mxu0 %vm691_vm1, %v935_v35 }
 0x1d6   : > { %v818_v41 = vadd.f32 %v1454_v40, %v1715_v21  ;;  %v809_v42 = vpop.f32.mrb[27].mxu1  ;;  %1484 = vmatmul.mubr.msk.bf16.gmra.mrb[20].mxu0 %vm691_vm1, %v936_v34  ;;  %v911_v44 = vmax.f32 %v815_v37, 0.0 }
 0x1d7   : > { %v810_v43 = vadd.f32 %v1715_v21, %v809_v42  ;;  %v909_v46 = vmax.f32 %v807_v39, 0.0 }
 0x1d8   : > { %v912_v45 = vmax.f32 %v818_v41, 0.0 }
 0x1d9   : > { %v910_v47 = vmax.f32 %v810_v43, 0.0 }
 0x1da   : > { %v938_v48 = vpack.c.bf16 %v912_v45, %v911_v44 }
 0x1db   : > { %v937_v49 = vpack.c.bf16 %v910_v47, %v909_v46  ;;  %v1457_v50 = vpop.f32.mrb[28].mxu1 }
 0x1dc   : > { %v831_v51 = vadd.f32 %v1457_v50, %v1715_v21  ;;  %v822_v52 = vpop.f32.mrb[29].mxu1 }
 0x1dd   : > { %v823_v53 = vadd.f32 %v1715_v21, %v822_v52  ;;  %v1458_v54 = vpop.f32.mrb[30].mxu1  ;;  %1487 = vmatprep.mubr.msk.bf16.mxu0 %vm691_vm1, %v937_v49 }
 0x1de   : > { %v834_v55 = vadd.f32 %v1458_v54, %v1715_v21  ;;  %v825_v56 = vpop.f32.mrb[31].mxu1  ;;  %1488 = vmatmul.mubr.msk.bf16.gmra.mrb[24].mxu0 %vm691_vm1, %v938_v48  ;;  %v915_v58 = vmax.f32 %v831_v51, 0.0 }
 0x1df   : > { %v826_v57 = vadd.f32 %v1715_v21, %v825_v56  ;;  %v913_v60 = vmax.f32 %v823_v53, 0.0 }
 0x1e0   : > { %v916_v59 = vmax.f32 %v834_v55, 0.0 }
 0x1e1   : > { %v914_v62 = vmax.f32 %v826_v57, 0.0  ;;  %v1769_v57 = vld [vmem:[%s1849_s6] ss:$0 sm:$0xff] }
 0x1e2   : > { %v940_v63 = vpack.c.bf16 %v916_v59, %v915_v58 }
 0x1e3   : > { %v939_v1 = vpack.c.bf16 %v914_v62, %v913_v60  ;;  %v1461_v2 = vpop.f32.mrb[32].mxu1 }
 0x1e4   : > { %v847_v3 = vadd.f32 %v1461_v2, %v1715_v21  ;;  %v838_v4 = vpop.f32.mrb[33].mxu1 }
 0x1e5   : > { %v839_v5 = vadd.f32 %v1715_v21, %v838_v4  ;;  %v1462_v6 = vpop.f32.mrb[34].mxu1  ;;  %1491 = vmatprep.mubr.msk.bf16.mxu0 %vm691_vm1, %v939_v1 }
 0x1e6   : > { %v850_v7 = vadd.f32 %v1462_v6, %v1715_v21  ;;  %v841_v8 = vpop.f32.mrb[35].mxu1  ;;  %1492 = vmatmul.mubr.msk.bf16.gmra.mrb[28].mxu0 %vm691_vm1, %v940_v63  ;;  %v919_v61 = vmax.f32 %v847_v3, 0.0 }
 0x1e7   : > { %v842_v0 = vadd.f32 %v1715_v21, %v841_v8  ;;  %v917_v10 = vmax.f32 %v839_v5, 0.0 }
 0x1e8   : > { %v920_v9 = vmax.f32 %v850_v7, 0.0 }
 0x1e9   : > { %v918_v11 = vmax.f32 %v842_v0, 0.0 }
 0x1ea   : > { %v942_v12 = vpack.c.bf16 %v920_v9, %v919_v61 }
 0x1eb   : > { %v941_v13 = vpack.c.bf16 %v918_v11, %v917_v10  ;;  %v1465_v14 = vpop.f32.mrb[36].mxu1 }
 0x1ec   : > { %v863_v15 = vadd.f32 %v1465_v14, %v1715_v21  ;;  %v854_v16 = vpop.f32.mrb[37].mxu1 }
 0x1ed   : > { %v855_v17 = vadd.f32 %v1715_v21, %v854_v16  ;;  %v1466_v18 = vpop.f32.mrb[38].mxu1  ;;  %1495 = vmatprep.mubr.msk.bf16.mxu0 %vm691_vm1, %v941_v13 }
 0x1ee   : > { %v866_v19 = vadd.f32 %v1466_v18, %v1715_v21  ;;  %v857_v20 = vpop.f32.mrb[39].mxu1  ;;  %1496 = vmatmul.mubr.msk.bf16.gmra.mrb[32].mxu0 %vm691_vm1, %v942_v12  ;;  %v923_v23 = vmax.f32 %v863_v15, 0.0 }
 0x1ef   : > { %v858_v22 = vadd.f32 %v1715_v21, %v857_v20  ;;  %v921_v25 = vmax.f32 %v855_v17, 0.0 }
 0x1f0   : > { %v924_v24 = vmax.f32 %v866_v19, 0.0 }
 0x1f1   : > { %v922_v26 = vmax.f32 %v858_v22, 0.0 }
 0x1f2   : > { %v944_v27 = vpack.c.bf16 %v924_v24, %v923_v23 }
 0x1f3   : > { %v943_v28 = vpack.c.bf16 %v922_v26, %v921_v25  ;;  %v1469_v29 = vpop.f32.mrb[40].mxu1 }
 0x1f4   : > { %v879_v30 = vadd.f32 %v1469_v29, %v1715_v21  ;;  %v870_v31 = vpop.f32.mrb[41].mxu1 }
 0x1f5   : > { %v871_v32 = vadd.f32 %v1715_v21, %v870_v31  ;;  %v1470_v33 = vpop.f32.mrb[42].mxu1  ;;  %1499 = vmatprep.mubr.msk.bf16.mxu0 %vm691_vm1, %v943_v28 }
 0x1f6   : > { %v882_v34 = vadd.f32 %v1470_v33, %v1715_v21  ;;  %v873_v35 = vpop.f32.mrb[43].mxu1  ;;  %1500 = vmatmul.mubr.msk.bf16.gmra.mrb[36].mxu0 %vm691_vm1, %v944_v27  ;;  %v927_v37 = vmax.f32 %v879_v30, 0.0 }
 0x1f7   : > { %v874_v36 = vadd.f32 %v1715_v21, %v873_v35  ;;  %v925_v39 = vmax.f32 %v871_v32, 0.0 }
 0x1f8   : > { %v928_v38 = vmax.f32 %v882_v34, 0.0 }
 0x1f9   : > { %v926_v40 = vmax.f32 %v874_v36, 0.0 }
 0x1fa   : > { %v946_v41 = vpack.c.bf16 %v928_v38, %v927_v37 }
 0x1fb   : > { %v945_v42 = vpack.c.bf16 %v926_v40, %v925_v39  ;;  %v1473_v43 = vpop.f32.mrb[44].mxu1 }
 0x1fc   : > { %v895_v44 = vadd.f32 %v1473_v43, %v1715_v21  ;;  %v886_v45 = vpop.f32.mrb[45].mxu1 }
 0x1fd   : > { %v887_v46 = vadd.f32 %v1715_v21, %v886_v45  ;;  %v1474_v47 = vpop.f32.mrb[46].mxu1  ;;  %1503 = vmatprep.mubr.msk.bf16.mxu0 %vm691_vm1, %v945_v42 }
 0x1fe   : > { %v898_v48 = vadd.f32 %v1474_v47, %v1715_v21  ;;  %v889_v49 = vpop.f32.mrb[47].mxu1  ;;  %1504 = vmatmul.mubr.msk.bf16.gmra.mrb[40].mxu0 %vm691_vm1, %v946_v41  ;;  %v931_v51 = vmax.f32 %v895_v44, 0.0 }
 0x1ff   : > { %v890_v50 = vadd.f32 %v1715_v21, %v889_v49  ;;  %v929_v53 = vmax.f32 %v887_v46, 0.0 }
 0x200   : > { %v932_v52 = vmax.f32 %v898_v48, 0.0 }
 0x201   : > { %v930_v54 = vmax.f32 %v890_v50, 0.0 }
 0x202   : > { %v948_v55 = vpack.c.bf16 %v932_v52, %v931_v51 }
 0x203   : > { %v947_v56 = vpack.c.bf16 %v930_v54, %v929_v53 }
 0x205   : > { %1507 = vmatprep.mubr.msk.bf16.mxu0 %vm691_vm1, %v947_v56 }
 0x206   : > { %1508 = vmatmul.mubr.msk.bf16.gmra.mrb[44].mxu0 %vm691_vm1, %v948_v55 }
 0x2a1   : > { %v1481_v21 = vpop.f32.mrb[16].mxu0 }
 0x2a2   : > { %v1063_v58 = vadd.f32 %v1481_v21, %v1769_v57  ;;  %v1054_v59 = vpop.f32.mrb[17].mxu0 }
 0x2a3   : > { %v1055_v60 = vadd.f32 %v1769_v57, %v1054_v59  ;;  %v1482_v62 = vpop.f32.mrb[18].mxu0 }
 0x2a4   : > { %1183 = vst [vmem:[%s1774_s29 + $0x10] sm:$0xff] %v1063_v58  ;;  %v1066_v63 = vadd.f32 %v1482_v62, %v1769_v57  ;;  %v1057_v1 = vpop.f32.mrb[19].mxu0 }
 0x2a5   : > { %1181 = vst [vmem:[%s1774_s29] sm:$0xff] %v1055_v60  ;;  %v1058_v2 = vadd.f32 %v1769_v57, %v1057_v1 }
 0x2a6   : > { %1184 = vst [vmem:[%s1774_s29 + $0x18] sm:$0xff] %v1066_v63 }
 0x2a7   : > { %1182 = vst [vmem:[%s1774_s29 + $0x8] sm:$0xff] %v1058_v2 }
 0x2a9   : > { %v1485_v3 = vpop.f32.mrb[20].mxu0 }
 0x2aa   : > { %v1079_v4 = vadd.f32 %v1485_v3, %v1769_v57  ;;  %v1070_v5 = vpop.f32.mrb[21].mxu0 }
 0x2ab   : > { %v1071_v6 = vadd.f32 %v1769_v57, %v1070_v5  ;;  %v1486_v7 = vpop.f32.mrb[22].mxu0 }
 0x2ac   : > { %1187 = vst [vmem:[%s1774_s29 + $0x30] sm:$0xff] %v1079_v4  ;;  %v1082_v8 = vadd.f32 %v1486_v7, %v1769_v57  ;;  %v1073_v0 = vpop.f32.mrb[23].mxu0 }
 0x2ad   : > { %1185 = vst [vmem:[%s1774_s29 + $0x20] sm:$0xff] %v1071_v6  ;;  %v1074_v61 = vadd.f32 %v1769_v57, %v1073_v0 }
 0x2ae   : > { %1188 = vst [vmem:[%s1774_s29 + $0x38] sm:$0xff] %v1082_v8 }
 0x2af   : > { %1186 = vst [vmem:[%s1774_s29 + $0x28] sm:$0xff] %v1074_v61 }
 0x2b1   : > { %v1489_v9 = vpop.f32.mrb[24].mxu0 }
 0x2b2   : > { %v1095_v10 = vadd.f32 %v1489_v9, %v1769_v57  ;;  %v1086_v11 = vpop.f32.mrb[25].mxu0 }
 0x2b3   : > { %v1087_v12 = vadd.f32 %v1769_v57, %v1086_v11  ;;  %v1490_v13 = vpop.f32.mrb[26].mxu0 }
 0x2b4   : > { %1191 = vst [vmem:[%s1774_s29 + $0x50] sm:$0xff] %v1095_v10  ;;  %v1098_v14 = vadd.f32 %v1490_v13, %v1769_v57  ;;  %v1089_v15 = vpop.f32.mrb[27].mxu0 }
 0x2b5   : > { %1189 = vst [vmem:[%s1774_s29 + $0x40] sm:$0xff] %v1087_v12  ;;  %v1090_v16 = vadd.f32 %v1769_v57, %v1089_v15 }
 0x2b6   : > { %1192 = vst [vmem:[%s1774_s29 + $0x58] sm:$0xff] %v1098_v14 }
 0x2b7   : > { %1190 = vst [vmem:[%s1774_s29 + $0x48] sm:$0xff] %v1090_v16 }
 0x2b9   : > { %v1493_v17 = vpop.f32.mrb[28].mxu0 }
 0x2ba   : > { %v1111_v18 = vadd.f32 %v1493_v17, %v1769_v57  ;;  %v1102_v19 = vpop.f32.mrb[29].mxu0 }
 0x2bb   : > { %v1103_v20 = vadd.f32 %v1769_v57, %v1102_v19  ;;  %v1494_v22 = vpop.f32.mrb[30].mxu0 }
 0x2bc   : > { %1195 = vst [vmem:[%s1774_s29 + $0x70] sm:$0xff] %v1111_v18  ;;  %v1114_v23 = vadd.f32 %v1494_v22, %v1769_v57  ;;  %v1105_v24 = vpop.f32.mrb[31].mxu0 }
 0x2bd   : > { %1193 = vst [vmem:[%s1774_s29 + $0x60] sm:$0xff] %v1103_v20  ;;  %v1106_v25 = vadd.f32 %v1769_v57, %v1105_v24 }
 0x2be   : > { %1196 = vst [vmem:[%s1774_s29 + $0x78] sm:$0xff] %v1114_v23 }
 0x2bf   : > { %1194 = vst [vmem:[%s1774_s29 + $0x68] sm:$0xff] %v1106_v25 }
 0x2c1   : > { %v1497_v26 = vpop.f32.mrb[32].mxu0 }
 0x2c2   : > { %v1127_v27 = vadd.f32 %v1497_v26, %v1769_v57  ;;  %v1118_v28 = vpop.f32.mrb[33].mxu0 }
 0x2c3   : > { %v1119_v29 = vadd.f32 %v1769_v57, %v1118_v28  ;;  %v1498_v30 = vpop.f32.mrb[34].mxu0 }
 0x2c4   : > { %1199 = vst [vmem:[%s1774_s29 + $0x90] sm:$0xff] %v1127_v27  ;;  %v1130_v31 = vadd.f32 %v1498_v30, %v1769_v57  ;;  %v1121_v32 = vpop.f32.mrb[35].mxu0 }
 0x2c5   : > { %1197 = vst [vmem:[%s1774_s29 + $0x80] sm:$0xff] %v1119_v29  ;;  %v1122_v33 = vadd.f32 %v1769_v57, %v1121_v32 }
 0x2c6   : > { %1200 = vst [vmem:[%s1774_s29 + $0x98] sm:$0xff] %v1130_v31 }
 0x2c7   : > { %1198 = vst [vmem:[%s1774_s29 + $0x88] sm:$0xff] %v1122_v33 }
 0x2c9   : > { %v1501_v34 = vpop.f32.mrb[36].mxu0 }
 0x2ca   : > { %v1143_v35 = vadd.f32 %v1501_v34, %v1769_v57  ;;  %v1134_v36 = vpop.f32.mrb[37].mxu0 }
 0x2cb   : > { %v1135_v37 = vadd.f32 %v1769_v57, %v1134_v36  ;;  %v1502_v38 = vpop.f32.mrb[38].mxu0 }
 0x2cc   : > { %1203 = vst [vmem:[%s1774_s29 + $0xb0] sm:$0xff] %v1143_v35  ;;  %v1146_v39 = vadd.f32 %v1502_v38, %v1769_v57  ;;  %v1137_v40 = vpop.f32.mrb[39].mxu0 }
 0x2cd   : > { %1201 = vst [vmem:[%s1774_s29 + $0xa0] sm:$0xff] %v1135_v37  ;;  %v1138_v41 = vadd.f32 %v1769_v57, %v1137_v40 }
 0x2ce   : > { %1204 = vst [vmem:[%s1774_s29 + $0xb8] sm:$0xff] %v1146_v39 }
 0x2cf   : > { %1202 = vst [vmem:[%s1774_s29 + $0xa8] sm:$0xff] %v1138_v41 }
 0x2d1   : > { %v1505_v42 = vpop.f32.mrb[40].mxu0 }
 0x2d2   : > { %v1159_v43 = vadd.f32 %v1505_v42, %v1769_v57  ;;  %v1150_v44 = vpop.f32.mrb[41].mxu0 }
 0x2d3   : > { %v1151_v45 = vadd.f32 %v1769_v57, %v1150_v44  ;;  %v1506_v46 = vpop.f32.mrb[42].mxu0 }
 0x2d4   : > { %1207 = vst [vmem:[%s1774_s29 + $0xd0] sm:$0xff] %v1159_v43  ;;  %v1162_v47 = vadd.f32 %v1506_v46, %v1769_v57  ;;  %v1153_v48 = vpop.f32.mrb[43].mxu0 }
 0x2d5   : > { %1205 = vst [vmem:[%s1774_s29 + $0xc0] sm:$0xff] %v1151_v45  ;;  %v1154_v49 = vadd.f32 %v1769_v57, %v1153_v48 }
 0x2d6   : > { %1208 = vst [vmem:[%s1774_s29 + $0xd8] sm:$0xff] %v1162_v47 }
 0x2d7   : > { %1206 = vst [vmem:[%s1774_s29 + $0xc8] sm:$0xff] %v1154_v49 }
 0x2d9   : > { %v1509_v50 = vpop.f32.mrb[44].mxu0 }
 0x2da   : > { %v1175_v51 = vadd.f32 %v1509_v50, %v1769_v57  ;;  %v1166_v52 = vpop.f32.mrb[45].mxu0 }
 0x2db   : > { %v1167_v53 = vadd.f32 %v1769_v57, %v1166_v52  ;;  %v1510_v54 = vpop.f32.mrb[46].mxu0 }
 0x2dc   : > { %1211 = vst [vmem:[%s1774_s29 + $0xf0] sm:$0xff] %v1175_v51  ;;  %v1178_v55 = vadd.f32 %v1510_v54, %v1769_v57  ;;  %v1169_v56 = vpop.f32.mrb[47].mxu0 }
 0x2dd   : > { %1209 = vst [vmem:[%s1774_s29 + $0xe0] sm:$0xff] %v1167_v53  ;;  %v1170_v21 = vadd.f32 %v1769_v57, %v1169_v56 }
 0x2de   : > { %1212 = vst [vmem:[%s1774_s29 + $0xf8] sm:$0xff] %v1178_v55 }
 0x2df   : > { %1210 = vst [vmem:[%s1774_s29 + $0xe8] sm:$0xff] %v1170_v21 }
 0x2e0 PF: > { %s17_s24 = sadd.s32 1, %s1548_s24  }
 0x2e1   : > { %p14_p4 = scmp.ge.s32.totalorder %s17_s24, 4  }
 0x2e3   :  { %16 = sbr.rel (!%p14_p4) target bundleno = 1 (0x1), region = 78 }

</bundles_post_ra>
